<compile_context>
chip_gen: v7x
topology: tpu7x:2x2x1
jax: 0.10.0
libtpu: 0.0.40
codegen_flags: <defaults>
</compile_context>

<pallas_src>
import jax
import jax.numpy as jnp
from jax.experimental import pallas as pl
from jax.experimental.pallas import tpu as pltpu


def _mixture_kernel(w_ref, x_ref, out_ref, wrep_ref):
    # w_ref:    (1, K)       mixture weights, resident across all grid steps
    # x_ref:    (TB, K, D)   current batch tile of the input
    # out_ref:  (TB, K)      weighted sums for this tile
    # wrep_ref: (1, K, D)    weights repeated along the last input dim
    x = x_ref[...]
    w = w_ref[...]                                    # (1, K)

    # sum over the feature dim first, then scale by the per-component weight.
    # Mathematically identical to (x * w[..., None]).sum(-1) but the multiply
    # runs on a (TB, K) tile instead of (TB, K, D).
    row_sum = jnp.sum(x, axis=-1)                     # (TB, K)
    out_ref[...] = row_sum * w                        # (1,K) broadcasts to (TB,K)

    # The module also returns the weights "repeated" to (1, K, D). It is
    # input-independent, so write it once; its block index never changes, so
    # Pallas keeps it resident and flushes it to HBM a single time at the end.
    @pl.when(pl.program_id(0) == 0)
    def _():
        wrep_ref[...] = jnp.broadcast_to(w[:, :, None], wrep_ref.shape)


def mixture_forward(x, weights, *, batch_tile=256):
    """x: (B, K, D) float, weights: (1, K) float.

    Returns (weighted, weights_rep) == ((B, K), (1, K, D)), matching
    MixtureModle.forward.
    """
    B, K, D = x.shape
    assert weights.shape == (1, K)
    x = x.astype(jnp.float32)
    w = weights.astype(jnp.float32)

    # NOTE: the torch forward computes softmax(self.weights) and immediately
    # overwrites it with the raw weights, so the softmax is intentionally
    # omitted (dead code in the reference module).

    # Batch tile: second-to-last dim of the (tb, K) output block must be a
    # multiple of 8 unless it equals the full batch.
    tb = B if B <= batch_tile else batch_tile
    if tb != B and tb % 8 != 0:
        tb = max(8, (tb // 8) * 8)
    grid = (pl.cdiv(B, tb),)

    out_shapes = (
        jax.ShapeDtypeStruct((B, K), jnp.float32),      # weighted
        jax.ShapeDtypeStruct((1, K, D), jnp.float32),   # repeated weights
    )

    weighted, w_rep = pl.pallas_call(
        _mixture_kernel,
        out_shape=out_shapes,
        grid=grid,
        in_specs=[
            # weights: constant block index -> stays resident in VMEM
            pl.BlockSpec((1, K), lambda i: (0, 0)),
            # input: one batch tile per grid step
            pl.BlockSpec((tb, K, D), lambda i: (i, 0, 0)),
        ],
        out_specs=(
            pl.BlockSpec((tb, K), lambda i: (i, 0)),
            # resident output, written once on step 0
            pl.BlockSpec((1, K, D), lambda i: (0, 0, 0)),
        ),
        compiler_params=pltpu.CompilerParams(
            # "arbitrary": the repeated-weights output block is shared across
            # the whole batch axis (written only on step 0), so the axis must
            # run sequentially on one core for correctness.
            dimension_semantics=("arbitrary",),
        ),
    )(w, x)
    return weighted, w_rep


if __name__ == "__main__":
    B, K, D = 2, 8, 32                      # batch=2, num_weights=8, feature=32
    key = jax.random.PRNGKey(0)
    x = jax.random.normal(key, (B, K, D), jnp.float32)
    # Parameter init from MixtureModle.__init__: ones(1, K) / K
    weights = jnp.ones((1, K), jnp.float32) / K

    weighted, w_rep = jax.jit(mixture_forward)(x, weights)
    jax.block_until_ready((weighted, w_rep))

    # pure-JAX reference (mirrors the torch forward exactly)
    ref_w = jnp.broadcast_to(weights[:, :, None], (1, K, D))
    ref_out = (x * ref_w).sum(axis=2)

    assert weighted.shape == (B, K)
    assert w_rep.shape == (1, K, D)
    assert jnp.allclose(weighted, ref_out, atol=1e-5, rtol=1e-5)
    assert jnp.allclose(w_rep, ref_w)
    print("KERNEL_OK")
</pallas_src>

<mosaic_0001>
module attributes {stable_mosaic.version = 11 : i64} {
  func.func @_mixture_kernel(%arg0: i32, %arg1: memref<1x8xf32, #tpu.memory_space<vmem>>, %arg2: memref<2x8x32xf32, #tpu.memory_space<vmem>>, %arg3: memref<2x8xf32, #tpu.memory_space<vmem>>, %arg4: memref<1x8x32xf32, #tpu.memory_space<vmem>>) attributes {dimension_semantics = [#tpu.dimension_semantics<arbitrary>], iteration_bounds = array<i64: 1>, scalar_prefetch = 0 : i64, scratch_operands = 0 : i64, tpu.core_type = #tpu.core_type<tc>, window_params = [{pipeline_mode = #tpu.pipeline_mode<synchronous>, transform_indices = @transform_0, window_bounds = array<i64: 1, 8>}, {transform_indices = @transform_1, window_bounds = array<i64: 2, 8, 32>}, {transform_indices = @transform_2, window_bounds = array<i64: 2, 8>}, {pipeline_mode = #tpu.pipeline_mode<synchronous>, transform_indices = @transform_3, window_bounds = array<i64: 1, 8, 32>}]} {
    %c0 = arith.constant 0 : index
    %c0_0 = arith.constant 0 : index
    %c0_1 = arith.constant 0 : index
    %0 = vector.load %arg2[%c0, %c0_0, %c0_1] : memref<2x8x32xf32, #tpu.memory_space<vmem>>, vector<2x8x32xf32>
    %c0_2 = arith.constant 0 : index
    %c0_3 = arith.constant 0 : index
    %1 = vector.load %arg1[%c0_2, %c0_3] : memref<1x8xf32, #tpu.memory_space<vmem>>, vector<1x8xf32>
    %cst = arith.constant dense<0.000000e+00> : vector<2x8xf32>
    %2 = vector.multi_reduction <add>, %0, %cst [2] : vector<2x8x32xf32> to vector<2x8xf32>
    %3 = vector.broadcast %1 : vector<1x8xf32> to vector<2x8xf32>
    %4 = arith.mulf %2, %3 : vector<2x8xf32>
    %c0_4 = arith.constant 0 : index
    %c0_5 = arith.constant 0 : index
    %5 = vector.load %arg3[%c0_4, %c0_5] : memref<2x8xf32, #tpu.memory_space<vmem>>, vector<2x8xf32>
    tpu.vector_store %arg3[%c0_4, %c0_5], %4 {strides = array<i32>} : memref<2x8xf32, #tpu.memory_space<vmem>>, vector<2x8xf32>,
    %c0_i32 = arith.constant 0 : i32
    %6 = arith.cmpi eq, %arg0, %c0_i32 : i32
    %7 = arith.extui %6 : i1 to i32
    %c0_i32_6 = arith.constant 0 : i32
    %8 = arith.cmpi ne, %7, %c0_i32_6 : i32
    scf.if %8 {
      %9 = vector.shape_cast %1 : vector<1x8xf32> to vector<1x8x1xf32>
      %10 = vector.shape_cast %9 : vector<1x8x1xf32> to vector<1x8x1xf32>
      %11 = vector.broadcast %10 : vector<1x8x1xf32> to vector<1x8x32xf32>
      %c0_7 = arith.constant 0 : index
      %c0_8 = arith.constant 0 : index
      %c0_9 = arith.constant 0 : index
      %12 = vector.load %arg4[%c0_7, %c0_8, %c0_9] : memref<1x8x32xf32, #tpu.memory_space<vmem>>, vector<1x8x32xf32>
      tpu.vector_store %arg4[%c0_7, %c0_8, %c0_9], %11 {strides = array<i32>} : memref<1x8x32xf32, #tpu.memory_space<vmem>>, vector<1x8x32xf32>,
    } else {
    }
    return
  }
  func.func @transform_0(%arg0: i32) -> (i32, i32) {
    %c0_i32 = arith.constant 0 : i32
    %c0_i32_0 = arith.constant 0 : i32
    %c0_i32_1 = arith.constant 0 : i32
    return %c0_i32, %c0_i32_0 : i32, i32
  }
  func.func @transform_1(%arg0: i32) -> (i32, i32, i32) {
    %c0_i32 = arith.constant 0 : i32
    %c0_i32_0 = arith.constant 0 : i32
    %c0_i32_1 = arith.constant 0 : i32
    return %arg0, %c0_i32, %c0_i32_0 : i32, i32, i32
  }
  func.func @transform_2(%arg0: i32) -> (i32, i32) {
    %c0_i32 = arith.constant 0 : i32
    %c0_i32_0 = arith.constant 0 : i32
    return %arg0, %c0_i32 : i32, i32
  }
  func.func @transform_3(%arg0: i32) -> (i32, i32, i32) {
    %c0_i32 = arith.constant 0 : i32
    %c0_i32_0 = arith.constant 0 : i32
    %c0_i32_1 = arith.constant 0 : i32
    %c0_i32_2 = arith.constant 0 : i32
    return %c0_i32, %c0_i32_0, %c0_i32_1 : i32, i32, i32
  }
}

</mosaic_0001>

<bundles_post_ra>
// kernel: mixture_forward.1
= control target key start
LH: loop header
LB: loop body
LE: loop exit
PB: predicated region body
PF: predicated region fallthrough
CT: control target
= control target key end

     0   :  { %9 = vsyncpa [#allocation3], 0  ;;  %s265_s0 = inlined_call_operand.vmem [shape: f32[1,8], index: 0, kind: input, shape index: {}]   ;;  %s266_s1 = inlined_call_operand.hbm [shape: f32[2,8,32], index: 1, kind: input, shape index: {}]   ;;  %s267_s2 = inlined_call_operand.hbm [shape: f32[2,8], index: 2, kind: output, shape index: {0}]   ;;  %s268_s3 = inlined_call_operand.hbm [shape: f32[1,8,32], index: 3, kind: output, shape index: {1}]  }
   0x1   :  { %10 = vsyncpa [#allocation4], 0 }
   0x2   :  { %11 = vsyncpa [#allocation7], 0  ;;  %s195_s12 = smov [#allocation2]   ;;  %s123_s16 = scalar_lea.hbm %s266_s1, 256 }
   0x3   :  { %s19_s13 = sshll.u32 %s195_s12, 4  ;;  %p124_p0 = scmp.ne.s32.totalorder %s266_s1, %s123_s16  ;;  %s20_s13 = int_to_ptr.vmem [resolvable:$true] %s19_s13 }
   0x4   :  { %p127_p1 = scmp.lt.u32.totalorder %s123_s16, %s266_s1 }
   0x6   :  { %p129_p2 = pnand %p127_p1, %p124_p0 }
   0x8   :  { %132 = shalt.err (!%p129_p2)
}
   0x9   :  { %s133_s21 = scalar_lea.vmem %s20_s13, 256  ;;  %p138_p4 = scmp.lt.s32.totalorder %s20_s13, %s20_s13 }
   0xa   :  { %p134_p3 = scmp.ne.s32.totalorder %s20_s13, %s133_s21  ;;  %p139_p5 = scmp.lt.s32.totalorder %s133_s21, %s133_s21 }
   0xc   :  { %p140_p6 = por %p139_p5, %p138_p4 }
   0xe   :  { %p141_p7 = pnand %p140_p6, %p134_p3 }
  0x10   :  { %144 = shalt.err (!%p141_p7)
}
  0x11   :  { %s196_s22 = smov 128   ;;  %s197_s23 = smov 8  }
  0x12   :  { %25 = dma.hbm_to_vmem [thread:$0]  %s266_s1, 256, %s20_s13, [#allocation3], %s196_s22, %s196_s22, %s197_s23  }
  0x13   :  { %189 = dma.done.wait [#allocation3], 256  }
  0x14   :  { %190 = vsyncadd [#allocation3], 4294967040  ;;  %vm32_vm0 = vcmask 261120   ;;  %v29_v0 = vld [vmem:[#allocation2] sm:$0xff]  ;;  %v30_v1 = vld [vmem:[#allocation2 + $0x8] sm:$0xff]  ;;  %v198_v5 = vmov 0   ;;  %v40_v11 = vlaneseq }
  0x15   :  { %v114_v2 = vld [vmem:[%s265_s0] ss:$0 sm:$0xff]  ;;  %v33_v3 = vsel %vm32_vm0, %v29_v0, 0.0  ;;  %v36_v4 = vsel %vm32_vm0, %v30_v1, 0.0  ;;  %121 = vset.pattern.permute.xlu1 %v198_v5  ;;  %122 = vset.pattern.permute.xlu0 %v198_v5  ;;  %s199_s0 = smov [#allocation6]   ;;  %s200_s28 = smov [#allocation5]  }
  0x16   :  { %45 = vbcast.lane.b32.xlu1 %v114_v2, 256  ;;  %34 = vadd.xlane.f32.xlu0 %v33_v3  ;;  %v41_v12 = vshrl.u32 %v40_v11, 7  ;;  %v59_v13 = vand.u32 127, %v40_v11  ;;  %s101_s1 = sshll.u32 %s199_s0, 4  ;;  %s91_s29 = sshll.u32 %s200_s28, 4  ;;  %vm68_vm1 = vcmask 1041409   ;;  %s102_s1 = int_to_ptr.vmem [resolvable:$true] %s101_s1  ;;  %s92_s29 = int_to_ptr.vmem [resolvable:$true] %s91_s29 }
  0x17   :  { %vm71_vm2 = vcmask 58368   ;;  %s145_s30 = scalar_lea.vmem %s102_s1, 128  ;;  %p150_p9 = scmp.lt.s32.totalorder %s102_s1, %s102_s1 }
  0x18   :  { %v62_v15 = vsub.s32 %v59_v13, %v41_v12  ;;  %p146_p8 = scmp.ne.s32.totalorder %s102_s1, %s145_s30  ;;  %p151_p10 = scmp.lt.s32.totalorder %s145_s30, %s145_s30 }
  0x1a   :  { %37 = vadd.xlane.f32.xlu0 %v36_v4  ;;  %p152_p11 = por %p151_p10, %p150_p9 }
  0x1c   :  { %p153_p12 = pnand %p152_p11, %p146_p8 }
  0x88   :  { %v46_v6 = vpop.permute.xlu1 %45 }
  0xa3   :  { %v35_v7 = vpop.xlane.xlu0 %34 }
  0xa4   :  { %v48_v8 = vmul.f32 %v46_v6, %v35_v7 }
  0xa6   :  { %53 = vperm.xlu1 %121, %v48_v8  }
  0xa7   :  { %v38_v9 = vpop.xlane.xlu0 %37 }
  0xa8   :  { %v49_v10 = vmul.f32 %v46_v6, %v38_v9 }
  0xaa   :  { %56 = vperm.xlu0 %122, %v49_v10   ;;  %82 = vbcast.lane.b32.xlu1 %v114_v2, 256 }
 0x125   :  { %v54_v14 = vpop.permute.xlu1 %53 }
 0x126   :  { %v63_v18 = vrot.slane %v54_v14, %v62_v15 }
 0x129   :  { %v57_v16 = vpop.permute.xlu0 %56  ;;  %v83_v17 = vpop.permute.xlu1 %82 }
 0x12a   :  { %v67_v19 = vrot.slane %v57_v16, %v62_v15  ;;  %84 = vst.msk [vmem:[#allocation6] sm:$0xff] %vm32_vm0, %v83_v17 }
 0x12b   :  { %156 = shalt.err (!%p153_p12)
}
 0x12c   :  { %s157_s6 = scalar_lea.hbm %s268_s3, 128 }
 0x12d   :  { %p158_p13 = scmp.ne.s32.totalorder %s268_s3, %s157_s6  ;;  %p161_p0 = scmp.lt.u32.totalorder %s157_s6, %s268_s3 }
 0x12f   :  { %p163_p1 = pnand %p161_p0, %p158_p13 }
 0x131   :  { %166 = shalt.err (!%p163_p1)
}
 0x132   :  { %104 = dma.vmem_to_hbm [thread:$0]  %s102_s1, 128, %s268_s3, [#allocation7]   ;;  %v69_v20 = vsel %vm68_vm1, %v67_v19, %v63_v18 }
 0x133   :  { %72 = vst.msk [vmem:[#allocation5] sm:$0x3] %vm71_vm2, %v69_v20  ;;  %s167_s13 = scalar_lea.vmem %s92_s29, 32  ;;  %p172_p3 = scmp.lt.s32.totalorder %s92_s29, %s92_s29 }
 0x134   :  { %p168_p2 = scmp.ne.s32.totalorder %s92_s29, %s167_s13  ;;  %p173_p4 = scmp.lt.s32.totalorder %s167_s13, %s167_s13 }
 0x136   :  { %p174_p5 = por %p173_p4, %p172_p3 }
 0x138   :  { %p175_p6 = pnand %p174_p5, %p168_p2 }
 0x13a   :  { %178 = shalt.err (!%p175_p6)
}
 0x13b   :  { %s179_s16 = scalar_lea.hbm %s267_s2, 32 }
 0x13c   :  { %p180_p7 = scmp.ne.s32.totalorder %s267_s2, %s179_s16  ;;  %p183_p8 = scmp.lt.u32.totalorder %s179_s16, %s267_s2 }
 0x13e   :  { %p185_p9 = pnand %p183_p8, %p180_p7 }
 0x140   :  { %188 = shalt.err (!%p185_p9)
}
 0x141   :  { %94 = dma.vmem_to_hbm [thread:$0]  %s92_s29, 32, %s267_s2, [#allocation4]  }
 0x142   :  { %191 = dma.done.wait [#allocation4], 32  }
 0x143   :  { %192 = vsyncadd [#allocation4], 4294967264 }
 0x144   :  { %193 = dma.done.wait [#allocation7], 128  }
 0x145   :  { %194 = vsyncadd [#allocation7], 4294967168 }
 0x146   :  { %111 = vsyncpa [#allocation3], 1 }
 0x147   :  { %112 = vsyncpa [#allocation4], 1 }
 0x148   :  { %113 = vsyncpa [#allocation7], 1 }

</bundles_post_ra>
